<compile_context>
chip_gen: v7x
topology: tpu7x:2x2x1
jax: 0.10.0
libtpu: 0.0.40
codegen_flags: <defaults>
</compile_context>

<pallas_src>
import functools

import jax
import jax.numpy as jnp
from jax.experimental import pallas as pl
from jax.experimental.pallas import tpu as pltpu


def _attention_kernel(x_ref, ctx_ref, wq_ref, wkv_ref, wo_ref, bo_ref, o_ref,
                      *, heads, dim_head, scale):
    # x_ref:   (Bb, N, Dq)      ctx_ref: (Bb, M, Dc)
    # wq_ref:  (Dq, inner)      wkv_ref: (Dc, 2*inner)
    # wo_ref:  (inner, Dp)      bo_ref:  (1, Dp)        (Dp = Dq padded to 128k)
    # o_ref:   (Bb, N, Dp)
    Bb, N, Dq = x_ref.shape
    _, M, Dc = ctx_ref.shape
    Dp = o_ref.shape[-1]
    inner = heads * dim_head

    # --- fused projections over all Bb*N / Bb*M rows (bf16 operands, f32 acc) ---
    x2 = x_ref[...].reshape(Bb * N, Dq).astype(jnp.bfloat16)
    c2 = ctx_ref[...].reshape(Bb * M, Dc).astype(jnp.bfloat16)
    wq = wq_ref[...].astype(jnp.bfloat16)
    wkv = wkv_ref[...].astype(jnp.bfloat16)
    wo = wo_ref[...].astype(jnp.bfloat16)

    q = jnp.dot(x2, wq, preferred_element_type=jnp.float32) * scale   # (Bb*N, inner)
    kv = jnp.dot(c2, wkv, preferred_element_type=jnp.float32)         # (Bb*M, 2*inner)

    q_bf = q.astype(jnp.bfloat16).reshape(Bb, N, inner)
    kv_bf = kv.astype(jnp.bfloat16).reshape(Bb, M, 2 * inner)

    # --- per-head attention; accumulate straight into the output projection ---
    y = jnp.zeros((Bb * N, Dp), jnp.float32)
    for h in range(heads):
        s = h * dim_head
        qh = q_bf[:, :, s:s + dim_head]                    # (Bb, N, d)  bf16
        kh = kv_bf[:, :, s:s + dim_head]                   # (Bb, M, d)  bf16
        vh = kv_bf[:, :, inner + s:inner + s + dim_head]   # (Bb, M, d)  bf16

        sim = jnp.einsum('bnd,bmd->bnm', qh, kh,
                         preferred_element_type=jnp.float32)           # (Bb, N, M) f32
        sim = sim - jnp.max(sim, axis=-1, keepdims=True)
        p = jnp.exp(sim)
        attn = p * pl.reciprocal(jnp.sum(p, axis=-1, keepdims=True), approx=True)

        oh = jnp.einsum('bnm,bmd->bnd', attn.astype(jnp.bfloat16), vh,
                        preferred_element_type=jnp.float32)            # (Bb, N, d)
        # incremental output projection: no concat, live ranges stay bounded
        y = y + jnp.dot(oh.reshape(Bb * N, dim_head).astype(jnp.bfloat16),
                        wo[s:s + dim_head, :],
                        preferred_element_type=jnp.float32)

    y = y + bo_ref[...]                                    # bias added once
    o_ref[...] = y.reshape(Bb, N, Dp).astype(o_ref.dtype)  # lane-dense store

    # TODO(synk): the optional `mask` argument of the PyTorch forward is not
    # implemented (mask=None path only); masked positions would need a -inf
    # fill before the softmax max/sum.


def attention_forward(x, context, wq_t, wkv_t, wo_t, bo, heads, dim_head,
                      block_b=None):
    """x: (B, N, Dq); context: (B, M, Dc); weights pre-transposed to (in, out)."""
    B, N, Dq = x.shape
    _, M, Dc = context.shape
    inner = heads * dim_head
    scale = dim_head ** (-0.5)

    # Lane-dense output: pad the output feature dim up to a multiple of 128 so
    # in-kernel stores are full-width; extra columns are zero and sliced off.
    Dp = ((Dq + 127) // 128) * 128
    if Dp != Dq:
        wo_p = jnp.pad(wo_t, ((0, 0), (0, Dp - Dq)))
        bo_p = jnp.pad(bo, ((0, Dp - Dq),))
    else:
        wo_p, bo_p = wo_t, bo
    bo_p = bo_p.reshape(1, Dp)

    # Batch block: amortize per-step overhead / fill MXU rows, but keep >= 2
    # grid steps when possible so both v7x TensorCores get work.
    if block_b is None:
        block_b = min(8, max(1, B // 2)) if B > 1 else 1
    block_b = max(1, min(block_b, B))
    grid = (pl.cdiv(B, block_b),)

    kernel = functools.partial(
        _attention_kernel, heads=heads, dim_head=dim_head, scale=scale)

    isz = x.dtype.itemsize
    flops = 2 * B * (N * Dq * inner + M * Dc * 2 * inner
                     + heads * N * M * dim_head * 2 + N * inner * Dp)
    bytes_accessed = isz * (x.size + context.size + wq_t.size + wkv_t.size
                            + wo_p.size + bo_p.size + B * N * Dp)

    out = pl.pallas_call(
        kernel,
        out_shape=jax.ShapeDtypeStruct((B, N, Dp), x.dtype),
        grid=grid,
        in_specs=[
            pl.BlockSpec((block_b, N, Dq), lambda b: (b, 0, 0)),
            pl.BlockSpec((block_b, M, Dc), lambda b: (b, 0, 0)),
            pl.BlockSpec((Dq, inner), lambda b: (0, 0)),
            pl.BlockSpec((Dc, 2 * inner), lambda b: (0, 0)),
            pl.BlockSpec((inner, Dp), lambda b: (0, 0)),
            pl.BlockSpec((1, Dp), lambda b: (0, 0)),
        ],
        out_specs=pl.BlockSpec((block_b, N, Dp), lambda b: (b, 0, 0)),
        compiler_params=pltpu.CompilerParams(
            dimension_semantics=("parallel",)),
        cost_estimate=pl.CostEstimate(
            flops=flops,
            transcendentals=B * heads * N * M,
            bytes_accessed=bytes_accessed),
    )(x, context, wq_t, wkv_t, wo_p, bo_p)

    return out[..., :Dq] if Dp != Dq else out


def attention_reference(x, context, wq_t, wkv_t, wo_t, bo, heads, dim_head):
    """Pure-JAX f32 reference mirroring the PyTorch forward exactly."""
    B, N, _ = x.shape
    _, M, _ = context.shape
    inner = heads * dim_head
    scale = dim_head ** (-0.5)

    q = x @ wq_t                    # (B, N, inner)
    kv = context @ wkv_t            # (B, M, 2*inner)
    k, v = kv[..., :inner], kv[..., inner:]

    def split_heads(t, L):
        return t.reshape(B, L, heads, dim_head).transpose(0, 2, 1, 3)  # (B, h, L, d)

    qh, kh, vh = split_heads(q, N), split_heads(k, M), split_heads(v, M)
    sim = jnp.einsum('bhid,bhjd->bhij', qh, kh) * scale
    attn = jax.nn.softmax(sim, axis=-1)
    out = jnp.einsum('bhij,bhjd->bhid', attn, vh)            # (B, h, N, d)
    out = out.transpose(0, 2, 1, 3).reshape(B, N, inner)     # b n (h d)
    return out @ wo_t + bo


if __name__ == "__main__":
    # small shapes consistent with the module
    B, N, M = 2, 8, 8
    query_dim = 32
    context_dim = 32       # context=None in the module -> context_dim = query_dim
    heads, dim_head = 4, 16
    inner = heads * dim_head

    key = jax.random.PRNGKey(0)
    kx, kq, kkv, kwo, kbo = jax.random.split(key, 5)

    x = jax.random.normal(kx, (B, N, query_dim), dtype=jnp.float32)
    context = x  # default(context, x): self-attention path

    # deterministic parameter init (torch Linear weight is (out, in); store transposed)
    wq_t = jax.random.normal(kq, (query_dim, inner), dtype=jnp.float32) * 0.05
    wkv_t = jax.random.normal(kkv, (context_dim, 2 * inner), dtype=jnp.float32) * 0.05
    wo_t = jax.random.normal(kwo, (inner, query_dim), dtype=jnp.float32) * 0.05
    bo = jax.random.normal(kbo, (query_dim,), dtype=jnp.float32) * 0.05

    out = attention_forward(x, context, wq_t, wkv_t, wo_t, bo, heads, dim_head)
    out = jax.block_until_ready(out)

    ref = attention_reference(x, context, wq_t, wkv_t, wo_t, bo, heads, dim_head)
    assert out.shape == (B, N, query_dim)
    err = jnp.max(jnp.abs(out - ref))
    # bf16 MXU operands + approx reciprocal => small drift vs f32 reference
    assert jnp.allclose(out, ref, atol=2e-2, rtol=2e-2), f"max abs err {err}"

    print("KERNEL_OK")
</pallas_src>

<mosaic_0001>
module attributes {stable_mosaic.version = 11 : i64} {
  func.func @_attention_kernel(%arg0: i32, %arg1: memref<1x8x32xf32, #tpu.memory_space<vmem>>, %arg2: memref<1x8x32xf32, #tpu.memory_space<vmem>>, %arg3: memref<32x64xf32, #tpu.memory_space<vmem>>, %arg4: memref<32x128xf32, #tpu.memory_space<vmem>>, %arg5: memref<64x128xf32, #tpu.memory_space<vmem>>, %arg6: memref<1x128xf32, #tpu.memory_space<vmem>>, %arg7: memref<1x8x128xf32, #tpu.memory_space<vmem>>) attributes {dimension_semantics = [#tpu.dimension_semantics<parallel>], iteration_bounds = array<i64: 2>, scalar_prefetch = 0 : i64, scratch_operands = 0 : i64, tpu.core_type = #tpu.core_type<tc>, window_params = [{transform_indices = @transform_0, window_bounds = array<i64: 1, 8, 32>}, {transform_indices = @transform_1, window_bounds = array<i64: 1, 8, 32>}, {pipeline_mode = #tpu.pipeline_mode<synchronous>, transform_indices = @transform_2, window_bounds = array<i64: 32, 64>}, {pipeline_mode = #tpu.pipeline_mode<synchronous>, transform_indices = @transform_3, window_bounds = array<i64: 32, 128>}, {pipeline_mode = #tpu.pipeline_mode<synchronous>, transform_indices = @transform_4, window_bounds = array<i64: 64, 128>}, {pipeline_mode = #tpu.pipeline_mode<synchronous>, transform_indices = @transform_5, window_bounds = array<i64: 1, 128>}, {transform_indices = @transform_6, window_bounds = array<i64: 1, 8, 128>}]} {
    %c0 = arith.constant 0 : index
    %c0_0 = arith.constant 0 : index
    %c0_1 = arith.constant 0 : index
    %0 = vector.load %arg1[%c0, %c0_0, %c0_1] : memref<1x8x32xf32, #tpu.memory_space<vmem>>, vector<1x8x32xf32>
    %1 = vector.shape_cast %0 : vector<1x8x32xf32> to vector<8x32xf32>
    %2 = arith.truncf %1 : vector<8x32xf32> to vector<8x32xbf16>
    %c0_2 = arith.constant 0 : index
    %c0_3 = arith.constant 0 : index
    %c0_4 = arith.constant 0 : index
    %3 = vector.load %arg2[%c0_2, %c0_3, %c0_4] : memref<1x8x32xf32, #tpu.memory_space<vmem>>, vector<1x8x32xf32>
    %4 = vector.shape_cast %3 : vector<1x8x32xf32> to vector<8x32xf32>
    %5 = arith.truncf %4 : vector<8x32xf32> to vector<8x32xbf16>
    %c0_5 = arith.constant 0 : index
    %c0_6 = arith.constant 0 : index
    %6 = vector.load %arg3[%c0_5, %c0_6] : memref<32x64xf32, #tpu.memory_space<vmem>>, vector<32x64xf32>
    %7 = arith.truncf %6 : vector<32x64xf32> to vector<32x64xbf16>
    %c0_7 = arith.constant 0 : index
    %c0_8 = arith.constant 0 : index
    %8 = vector.load %arg4[%c0_7, %c0_8] : memref<32x128xf32, #tpu.memory_space<vmem>>, vector<32x128xf32>
    %9 = arith.truncf %8 : vector<32x128xf32> to vector<32x128xbf16>
    %c0_9 = arith.constant 0 : index
    %c0_10 = arith.constant 0 : index
    %10 = vector.load %arg5[%c0_9, %c0_10] : memref<64x128xf32, #tpu.memory_space<vmem>>, vector<64x128xf32>
    %11 = arith.truncf %10 : vector<64x128xf32> to vector<64x128xbf16>
    %cst = arith.constant dense<0.000000e+00> : vector<8x64xf32>
    %12 = tpu.matmul %2, %7, %cst {dimension_numbers = #tpu.dot_dimension_numbers<[1], [0], [0], [1], [0, 0, 1, 1], [], []>} : vector<8x32xbf16>, vector<32x64xbf16>, vector<8x64xf32> -> vector<8x64xf32>
    %cst_11 = arith.constant 2.500000e-01 : f32
    %13 = vector.broadcast %cst_11 : f32 to vector<8x64xf32>
    %14 = arith.mulf %12, %13 : vector<8x64xf32>
    %cst_12 = arith.constant dense<0.000000e+00> : vector<8x128xf32>
    %15 = tpu.matmul %5, %9, %cst_12 {dimension_numbers = #tpu.dot_dimension_numbers<[1], [0], [0], [1], [0, 0, 1, 1], [], []>} : vector<8x32xbf16>, vector<32x128xbf16>, vector<8x128xf32> -> vector<8x128xf32>
    %16 = arith.truncf %14 : vector<8x64xf32> to vector<8x64xbf16>
    %17 = vector.shape_cast %16 : vector<8x64xbf16> to vector<1x8x64xbf16>
    %18 = arith.truncf %15 : vector<8x128xf32> to vector<8x128xbf16>
    %19 = vector.shape_cast %18 : vector<8x128xbf16> to vector<1x8x128xbf16>
    %cst_13 = arith.constant 0.000000e+00 : f32
    %20 = vector.broadcast %cst_13 : f32 to vector<8x128xf32>
    %21 = vector.extract_strided_slice %17 {offsets = [0, 0, 0], sizes = [1, 8, 16], strides = [1, 1, 1]} : vector<1x8x64xbf16> to vector<1x8x16xbf16>
    %22 = vector.extract_strided_slice %19 {offsets = [0, 0, 0], sizes = [1, 8, 16], strides = [1, 1, 1]} : vector<1x8x128xbf16> to vector<1x8x16xbf16>
    %23 = vector.extract_strided_slice %19 {offsets = [0, 0, 64], sizes = [1, 8, 16], strides = [1, 1, 1]} : vector<1x8x128xbf16> to vector<1x8x16xbf16>
    "tpu.trace_start"() <{level = 10 : i32, message = "bnd,bmd->bnm"}> : () -> ()
    %cst_14 = arith.constant dense<0.000000e+00> : vector<1x8x8xf32>
    %24 = tpu.matmul %21, %22, %cst_14 {dimension_numbers = #tpu.dot_dimension_numbers<[2], [2], [1], [1], [0, 0, 0, 1, 1, 1], [0], [0]>} : vector<1x8x16xbf16>, vector<1x8x16xbf16>, vector<1x8x8xf32> -> vector<1x8x8xf32>
    "tpu.trace_stop"() : () -> ()
    %cst_15 = arith.constant dense<0xFF800000> : vector<1x8xf32>
    %25 = vector.multi_reduction <maximumf>, %24, %cst_15 [2] : vector<1x8x8xf32> to vector<1x8xf32>
    %26 = vector.shape_cast %25 : vector<1x8xf32> to vector<1x8x1xf32>
    %27 = vector.broadcast %26 : vector<1x8x1xf32> to vector<1x8x8xf32>
    %28 = arith.subf %24, %27 : vector<1x8x8xf32>
    %29 = math.exp %28 : vector<1x8x8xf32>
    %cst_16 = arith.constant dense<0.000000e+00> : vector<1x8xf32>
    %30 = vector.multi_reduction <add>, %29, %cst_16 [2] : vector<1x8x8xf32> to vector<1x8xf32>
    %31 = vector.shape_cast %30 : vector<1x8xf32> to vector<1x8x1xf32>
    %32 = tpu.reciprocal %31 {approx = true} : vector<1x8x1xf32> -> vector<1x8x1xf32>
    %33 = vector.broadcast %32 : vector<1x8x1xf32> to vector<1x8x8xf32>
    %34 = arith.mulf %29, %33 : vector<1x8x8xf32>
    %35 = arith.truncf %34 : vector<1x8x8xf32> to vector<1x8x8xbf16>
    "tpu.trace_start"() <{level = 10 : i32, message = "bnm,bmd->bnd"}> : () -> ()
    %cst_17 = arith.constant dense<0.000000e+00> : vector<1x8x16xf32>
    %36 = tpu.matmul %35, %23, %cst_17 {dimension_numbers = #tpu.dot_dimension_numbers<[2], [1], [1], [2], [0, 0, 0, 1, 1, 2], [0], [0]>} : vector<1x8x8xbf16>, vector<1x8x16xbf16>, vector<1x8x16xf32> -> vector<1x8x16xf32>
    "tpu.trace_stop"() : () -> ()
    %37 = vector.shape_cast %36 : vector<1x8x16xf32> to vector<8x16xf32>
    %38 = arith.truncf %37 : vector<8x16xf32> to vector<8x16xbf16>
    %39 = vector.extract_strided_slice %11 {offsets = [0, 0], sizes = [16, 128], strides = [1, 1]} : vector<64x128xbf16> to vector<16x128xbf16>
    %cst_18 = arith.constant dense<0.000000e+00> : vector<8x128xf32>
    %40 = tpu.matmul %38, %39, %cst_18 {dimension_numbers = #tpu.dot_dimension_numbers<[1], [0], [0], [1], [0, 0, 1, 1], [], []>} : vector<8x16xbf16>, vector<16x128xbf16>, vector<8x128xf32> -> vector<8x128xf32>
    %41 = arith.addf %20, %40 : vector<8x128xf32>
    %42 = vector.extract_strided_slice %17 {offsets = [0, 0, 16], sizes = [1, 8, 16], strides = [1, 1, 1]} : vector<1x8x64xbf16> to vector<1x8x16xbf16>
    %43 = vector.extract_strided_slice %19 {offsets = [0, 0, 16], sizes = [1, 8, 16], strides = [1, 1, 1]} : vector<1x8x128xbf16> to vector<1x8x16xbf16>
    %44 = vector.extract_strided_slice %19 {offsets = [0, 0, 80], sizes = [1, 8, 16], strides = [1, 1, 1]} : vector<1x8x128xbf16> to vector<1x8x16xbf16>
    "tpu.trace_start"() <{level = 10 : i32, message = "bnd,bmd->bnm"}> : () -> ()
    %cst_19 = arith.constant dense<0.000000e+00> : vector<1x8x8xf32>
    %45 = tpu.matmul %42, %43, %cst_19 {dimension_numbers = #tpu.dot_dimension_numbers<[2], [2], [1], [1], [0, 0, 0, 1, 1, 1], [0], [0]>} : vector<1x8x16xbf16>, vector<1x8x16xbf16>, vector<1x8x8xf32> -> vector<1x8x8xf32>
    "tpu.trace_stop"() : () -> ()
    %cst_20 = arith.constant dense<0xFF800000> : vector<1x8xf32>
    %46 = vector.multi_reduction <maximumf>, %45, %cst_20 [2] : vector<1x8x8xf32> to vector<1x8xf32>
    %47 = vector.shape_cast %46 : vector<1x8xf32> to vector<1x8x1xf32>
    %48 = vector.broadcast %47 : vector<1x8x1xf32> to vector<1x8x8xf32>
    %49 = arith.subf %45, %48 : vector<1x8x8xf32>
    %50 = math.exp %49 : vector<1x8x8xf32>
    %cst_21 = arith.constant dense<0.000000e+00> : vector<1x8xf32>
    %51 = vector.multi_reduction <add>, %50, %cst_21 [2] : vector<1x8x8xf32> to vector<1x8xf32>
    %52 = vector.shape_cast %51 : vector<1x8xf32> to vector<1x8x1xf32>
    %53 = tpu.reciprocal %52 {approx = true} : vector<1x8x1xf32> -> vector<1x8x1xf32>
    %54 = vector.broadcast %53 : vector<1x8x1xf32> to vector<1x8x8xf32>
    %55 = arith.mulf %50, %54 : vector<1x8x8xf32>
    %56 = arith.truncf %55 : vector<1x8x8xf32> to vector<1x8x8xbf16>
    "tpu.trace_start"() <{level = 10 : i32, message = "bnm,bmd->bnd"}> : () -> ()
    %cst_22 = arith.constant dense<0.000000e+00> : vector<1x8x16xf32>
    %57 = tpu.matmul %56, %44, %cst_22 {dimension_numbers = #tpu.dot_dimension_numbers<[2], [1], [1], [2], [0, 0, 0, 1, 1, 2], [0], [0]>} : vector<1x8x8xbf16>, vector<1x8x16xbf16>, vector<1x8x16xf32> -> vector<1x8x16xf32>
    "tpu.trace_stop"() : () -> ()
    %58 = vector.shape_cast %57 : vector<1x8x16xf32> to vector<8x16xf32>
    %59 = arith.truncf %58 : vector<8x16xf32> to vector<8x16xbf16>
    %60 = vector.extract_strided_slice %11 {offsets = [16, 0], sizes = [16, 128], strides = [1, 1]} : vector<64x128xbf16> to vector<16x128xbf16>
    %cst_23 = arith.constant dense<0.000000e+00> : vector<8x128xf32>
    %61 = tpu.matmul %59, %60, %cst_23 {dimension_numbers = #tpu.dot_dimension_numbers<[1], [0], [0], [1], [0, 0, 1, 1], [], []>} : vector<8x16xbf16>, vector<16x128xbf16>, vector<8x128xf32> -> vector<8x128xf32>
    %62 = arith.addf %41, %61 : vector<8x128xf32>
    %63 = vector.extract_strided_slice %17 {offsets = [0, 0, 32], sizes = [1, 8, 16], strides = [1, 1, 1]} : vector<1x8x64xbf16> to vector<1x8x16xbf16>
    %64 = vector.extract_strided_slice %19 {offsets = [0, 0, 32], sizes = [1, 8, 16], strides = [1, 1, 1]} : vector<1x8x128xbf16> to vector<1x8x16xbf16>
    %65 = vector.extract_strided_slice %19 {offsets = [0, 0, 96], sizes = [1, 8, 16], strides = [1, 1, 1]} : vector<1x8x128xbf16> to vector<1x8x16xbf16>
    "tpu.trace_start"() <{level = 10 : i32, message = "bnd,bmd->bnm"}> : () -> ()
    %cst_24 = arith.constant dense<0.000000e+00> : vector<1x8x8xf32>
    %66 = tpu.matmul %63, %64, %cst_24 {dimension_numbers = #tpu.dot_dimension_numbers<[2], [2], [1], [1], [0, 0, 0, 1, 1, 1], [0], [0]>} : vector<1x8x16xbf16>, vector<1x8x16xbf16>, vector<1x8x8xf32> -> vector<1x8x8xf32>
    "tpu.trace_stop"() : () -> ()
    %cst_25 = arith.constant dense<0xFF800000> : vector<1x8xf32>
    %67 = vector.multi_reduction <maximumf>, %66, %cst_25 [2] : vector<1x8x8xf32> to vector<1x8xf32>
    %68 = vector.shape_cast %67 : vector<1x8xf32> to vector<1x8x1xf32>
    %69 = vector.broadcast %68 : vector<1x8x1xf32> to vector<1x8x8xf32>
    %70 = arith.subf %66, %69 : vector<1x8x8xf32>
    %71 = math.exp %70 : vector<1x8x8xf32>
    %cst_26 = arith.constant dense<0.000000e+00> : vector<1x8xf32>
    %72 = vector.multi_reduction <add>, %71, %cst_26 [2] : vector<1x8x8xf32> to vector<1x8xf32>
    %73 = vector.shape_cast %72 : vector<1x8xf32> to vector<1x8x1xf32>
    %74 = tpu.reciprocal %73 {approx = true} : vector<1x8x1xf32> -> vector<1x8x1xf32>
    %75 = vector.broadcast %74 : vector<1x8x1xf32> to vector<1x8x8xf32>
    %76 = arith.mulf %71, %75 : vector<1x8x8xf32>
    %77 = arith.truncf %76 : vector<1x8x8xf32> to vector<1x8x8xbf16>
    "tpu.trace_start"() <{level = 10 : i32, message = "bnm,bmd->bnd"}> : () -> ()
    %cst_27 = arith.constant dense<0.000000e+00> : vector<1x8x16xf32>
    %78 = tpu.matmul %77, %65, %cst_27 {dimension_numbers = #tpu.dot_dimension_numbers<[2], [1], [1], [2], [0, 0, 0, 1, 1, 2], [0], [0]>} : vector<1x8x8xbf16>, vector<1x8x16xbf16>, vector<1x8x16xf32> -> vector<1x8x16xf32>
    "tpu.trace_stop"() : () -> ()
    %79 = vector.shape_cast %78 : vector<1x8x16xf32> to vector<8x16xf32>
    %80 = arith.truncf %79 : vector<8x16xf32> to vector<8x16xbf16>
    %81 = vector.extract_strided_slice %11 {offsets = [32, 0], sizes = [16, 128], strides = [1, 1]} : vector<64x128xbf16> to vector<16x128xbf16>
    %cst_28 = arith.constant dense<0.000000e+00> : vector<8x128xf32>
    %82 = tpu.matmul %80, %81, %cst_28 {dimension_numbers = #tpu.dot_dimension_numbers<[1], [0], [0], [1], [0, 0, 1, 1], [], []>} : vector<8x16xbf16>, vector<16x128xbf16>, vector<8x128xf32> -> vector<8x128xf32>
    %83 = arith.addf %62, %82 : vector<8x128xf32>
    %84 = vector.extract_strided_slice %17 {offsets = [0, 0, 48], sizes = [1, 8, 16], strides = [1, 1, 1]} : vector<1x8x64xbf16> to vector<1x8x16xbf16>
    %85 = vector.extract_strided_slice %19 {offsets = [0, 0, 48], sizes = [1, 8, 16], strides = [1, 1, 1]} : vector<1x8x128xbf16> to vector<1x8x16xbf16>
    %86 = vector.extract_strided_slice %19 {offsets = [0, 0, 112], sizes = [1, 8, 16], strides = [1, 1, 1]} : vector<1x8x128xbf16> to vector<1x8x16xbf16>
    "tpu.trace_start"() <{level = 10 : i32, message = "bnd,bmd->bnm"}> : () -> ()
    %cst_29 = arith.constant dense<0.000000e+00> : vector<1x8x8xf32>
    %87 = tpu.matmul %84, %85, %cst_29 {dimension_numbers = #tpu.dot_dimension_numbers<[2], [2], [1], [1], [0, 0, 0, 1, 1, 1], [0], [0]>} : vector<1x8x16xbf16>, vector<1x8x16xbf16>, vector<1x8x8xf32> -> vector<1x8x8xf32>
    "tpu.trace_stop"() : () -> ()
    %cst_30 = arith.constant dense<0xFF800000> : vector<1x8xf32>
    %88 = vector.multi_reduction <maximumf>, %87, %cst_30 [2] : vector<1x8x8xf32> to vector<1x8xf32>
    %89 = vector.shape_cast %88 : vector<1x8xf32> to vector<1x8x1xf32>
    %90 = vector.broadcast %89 : vector<1x8x1xf32> to vector<1x8x8xf32>
    %91 = arith.subf %87, %90 : vector<1x8x8xf32>
    %92 = math.exp %91 : vector<1x8x8xf32>
    %cst_31 = arith.constant dense<0.000000e+00> : vector<1x8xf32>
    %93 = vector.multi_reduction <add>, %92, %cst_31 [2] : vector<1x8x8xf32> to vector<1x8xf32>
    %94 = vector.shape_cast %93 : vector<1x8xf32> to vector<1x8x1xf32>
    %95 = tpu.reciprocal %94 {approx = true} : vector<1x8x1xf32> -> vector<1x8x1xf32>
    %96 = vector.broadcast %95 : vector<1x8x1xf32> to vector<1x8x8xf32>
    %97 = arith.mulf %92, %96 : vector<1x8x8xf32>
    %98 = arith.truncf %97 : vector<1x8x8xf32> to vector<1x8x8xbf16>
    "tpu.trace_start"() <{level = 10 : i32, message = "bnm,bmd->bnd"}> : () -> ()
    %cst_32 = arith.constant dense<0.000000e+00> : vector<1x8x16xf32>
    %99 = tpu.matmul %98, %86, %cst_32 {dimension_numbers = #tpu.dot_dimension_numbers<[2], [1], [1], [2], [0, 0, 0, 1, 1, 2], [0], [0]>} : vector<1x8x8xbf16>, vector<1x8x16xbf16>, vector<1x8x16xf32> -> vector<1x8x16xf32>
    "tpu.trace_stop"() : () -> ()
    %100 = vector.shape_cast %99 : vector<1x8x16xf32> to vector<8x16xf32>
    %101 = arith.truncf %100 : vector<8x16xf32> to vector<8x16xbf16>
    %102 = vector.extract_strided_slice %11 {offsets = [48, 0], sizes = [16, 128], strides = [1, 1]} : vector<64x128xbf16> to vector<16x128xbf16>
    %cst_33 = arith.constant dense<0.000000e+00> : vector<8x128xf32>
    %103 = tpu.matmul %101, %102, %cst_33 {dimension_numbers = #tpu.dot_dimension_numbers<[1], [0], [0], [1], [0, 0, 1, 1], [], []>} : vector<8x16xbf16>, vector<16x128xbf16>, vector<8x128xf32> -> vector<8x128xf32>
    %104 = arith.addf %83, %103 : vector<8x128xf32>
    %c0_34 = arith.constant 0 : index
    %c0_35 = arith.constant 0 : index
    %105 = vector.load %arg6[%c0_34, %c0_35] : memref<1x128xf32, #tpu.memory_space<vmem>>, vector<1x128xf32>
    %106 = vector.broadcast %105 : vector<1x128xf32> to vector<8x128xf32>
    %107 = arith.addf %104, %106 : vector<8x128xf32>
    %108 = vector.shape_cast %107 : vector<8x128xf32> to vector<1x8x128xf32>
    %c0_36 = arith.constant 0 : index
    %c0_37 = arith.constant 0 : index
    %c0_38 = arith.constant 0 : index
    %109 = vector.load %arg7[%c0_36, %c0_37, %c0_38] : memref<1x8x128xf32, #tpu.memory_space<vmem>>, vector<1x8x128xf32>
    tpu.vector_store %arg7[%c0_36, %c0_37, %c0_38], %108 {strides = array<i32>} : memref<1x8x128xf32, #tpu.memory_space<vmem>>, vector<1x8x128xf32>,
    return
  }
  func.func @transform_0(%arg0: i32) -> (i32, i32, i32) {
    %c0_i32 = arith.constant 0 : i32
    %c0_i32_0 = arith.constant 0 : i32
    %c0_i32_1 = arith.constant 0 : i32
    return %arg0, %c0_i32, %c0_i32_0 : i32, i32, i32
  }
  func.func @transform_1(%arg0: i32) -> (i32, i32, i32) {
    %c0_i32 = arith.constant 0 : i32
    %c0_i32_0 = arith.constant 0 : i32
    %c0_i32_1 = arith.constant 0 : i32
    return %arg0, %c0_i32, %c0_i32_0 : i32, i32, i32
  }
  func.func @transform_2(%arg0: i32) -> (i32, i32) {
    %c0_i32 = arith.constant 0 : i32
    %c0_i32_0 = arith.constant 0 : i32
    %c0_i32_1 = arith.constant 0 : i32
    return %c0_i32, %c0_i32_0 : i32, i32
  }
  func.func @transform_3(%arg0: i32) -> (i32, i32) {
    %c0_i32 = arith.constant 0 : i32
    %c0_i32_0 = arith.constant 0 : i32
    %c0_i32_1 = arith.constant 0 : i32
    return %c0_i32, %c0_i32_0 : i32, i32
  }
  func.func @transform_4(%arg0: i32) -> (i32, i32) {
    %c0_i32 = arith.constant 0 : i32
    %c0_i32_0 = arith.constant 0 : i32
    %c0_i32_1 = arith.constant 0 : i32
    return %c0_i32, %c0_i32_0 : i32, i32
  }
  func.func @transform_5(%arg0: i32) -> (i32, i32) {
    %c0_i32 = arith.constant 0 : i32
    %c0_i32_0 = arith.constant 0 : i32
    %c0_i32_1 = arith.constant 0 : i32
    return %c0_i32, %c0_i32_0 : i32, i32
  }
  func.func @transform_6(%arg0: i32) -> (i32, i32, i32) {
    %c0_i32 = arith.constant 0 : i32
    %c0_i32_0 = arith.constant 0 : i32
    %c0_i32_1 = arith.constant 0 : i32
    return %arg0, %c0_i32, %c0_i32_0 : i32, i32, i32
  }
}

</mosaic_0001>

<bundles_post_ra>
// kernel: tpu_custom_call.1
= control target key start
LH: loop header
LB: loop body
LE: loop exit
PB: predicated region body
PF: predicated region fallthrough
CT: control target
= control target key end

     0   :  { %s2166_s0 = inlined_call_operand.hbm [shape: f32[2,8,32], index: 0, kind: input, shape index: {}]   ;;  %s2167_s1 = inlined_call_operand.hbm [shape: f32[2,8,32], index: 1, kind: input, shape index: {}]   ;;  %s2168_s2 = inlined_call_operand.hbm [shape: f32[32,64], index: 2, kind: input, shape index: {}]   ;;  %s2169_s3 = inlined_call_operand.hbm [shape: f32[32,128], index: 3, kind: input, shape index: {}]   ;;  %s2170_s4 = inlined_call_operand.hbm [shape: f32[64,128], index: 4, kind: input, shape index: {}]   ;;  %s2171_s5 = inlined_call_operand.vmem [shape: f32[1,128], index: 5, kind: input, shape index: {}]   ;;  %s2172_s6 = inlined_call_operand.hbm [shape: f32[2,8,128], index: 6, kind: output, shape index: {}]  }
   0x1   :  { %2177 = sst [smem:[#allocation17_spill]] %s2168_s2 }
   0x2   :  { %2178 = sst [smem:[#allocation18_spill]] %s2169_s3 }
   0x3   :  { %2179 = sst [smem:[#allocation19_spill]] %s2170_s4 }
   0x4   :  { %11 = vsyncpa [#allocation3], 0 }
   0x5   :  { %13 = vsyncpa [#allocation3 + $0x1], 0 }
   0x6   :  { %14 = vsyncpa [#allocation6], 0 }
   0x7   :  { %16 = vsyncpa [#allocation6 + $0x1], 0 }
   0x8   :  { %17 = vsyncpa [#allocation9], 0 }
   0x9   :  { %18 = vsyncpa [#allocation4], 0 }
   0xa   :  { %20 = vsyncpa [#allocation4 + $0x1], 0  ;;  %s1768_s21 = smov 0   ;;  %s1770_s22 = smov 0  }
   0xb   :  { %s1772_s23 = smov 0   ;;  %s1774_s24 = smov 0  }
   0xc LB: > { %s1789_s25 = sadd.s32 4294967295, %s1714_s24   ;;  %s1229_s26 = sadd.s32 4294967294, %s1714_s24   ;;  %s1714_s24 = sphi %s1774_s24, %s2203_s24   ;;  %s1710_s23 = sphi %s1772_s23, %s2202_s23   ;;  %s1706_s22 = sphi %s1770_s22, %s2201_s22   ;;  %s1702_s21 = sphi %s1768_s21, %s2200_s21  }
   0xd   : > { %p46_p0 = scmp.ne.s32.totalorder %s1706_s22, %s1702_s21  ;;  %p2173_p1 = scmp.eq.s32.totalorder %s1789_s25, 0 }
   0xe   : > { %p186_p3 = scmp.eq.s32.totalorder %s1229_s26, 1  ;;  %p1230_p5 = scmp.ge.s32.totalorder %s1714_s24, 1 }
   0xf   : > { %p1798_p4 = por %p2173_p1, %p46_p0  ;;  %p193_p7 = scmp.lt.s32.totalorder %s1714_s24, 3 }
  0x10   : > { %p1803_p6 = por %p186_p3, %p46_p0  ;;  %s1716_s30 = smov [#allocation7]  }
  0x11   : > { %s2180_s27 = scalar_select %p1798_p4, 1, 0 }
  0x12   : > { %s2181_s28 = scalar_select %p1803_p6, 1, 0 }
  0x13   : > { %p1808_p8 = pnand %p1230_p5, %p193_p7  ;;  %s205_s7 = sshll.u32 %s1716_s30, 4  ;;  %s1812_s7 = int_to_ptr.vmem [resolvable:$true] %s205_s7 }
  0x14   : > { %s1717_s9 = smov [#allocation8]   ;;  %s1718_s11 = smov [#allocation10]  }
  0x15   : > { %s2182_s29 = scalar_select %p1808_p8, 1, 0 }
  0x16   : > { %p1401_p9 = pneg %p1808_p8  ;;  %s218_s10 = sshll.u32 %s1717_s9, 4  ;;  %s1823_s10 = int_to_ptr.vmem [resolvable:$true] %s218_s10 }
  0x17   : > { %s1825_s12 = sshll.u32 %s1718_s11, 4  ;;  %s2184_s2 = sld [smem:[#allocation17_spill]]  ;;  %s232_s12 = int_to_ptr.vmem [resolvable:$true] %s1825_s12 }
  0x18   : > { %p1819_p11 = pnand %p1401_p9, %p2173_p1 }
  0x1a   : > { %p1835_p13 = pneg %p1819_p11 }
  0x1d   : > { %s1492_s15 = scalar_lea.hbm %s2184_s2, 512 }
  0x1e   : > { %p1493_p12 = scmp.ne.s32.totalorder %s2184_s2, %s1492_s15  ;;  %p1499_p5 = scmp.lt.u32.totalorder %s1492_s15, %s2184_s2 }
  0x20   : > { %p1495_p0 = pnand %p1835_p13, %p1493_p12 }
  0x22   : > { %p1496_p3 = pneg %p1495_p0 }
  0x24   : > { %p1501_p7 = pnand %p1499_p5, %p1496_p3 }
  0x26   : > { %1504 = shalt.err (!%p1501_p7)
}
  0x27   : > { %s1505_s26 = scalar_lea.vmem %s1812_s7, 512  ;;  %p1513_p2 = scmp.lt.s32.totalorder %s1812_s7, %s1812_s7 }
  0x28   : > { %p1506_p9 = scmp.ne.s32.totalorder %s1812_s7, %s1505_s26  ;;  %p1514_p6 = scmp.lt.s32.totalorder %s1505_s26, %s1505_s26 }
  0x2a   : > { %p1508_p10 = pnand %p1506_p9, %p1835_p13  ;;  %p1515_p12 = por %p1514_p6, %p1513_p2 }
  0x2c   : > { %p1509_p1 = pneg %p1508_p10 }
  0x2e   : > { %p1516_p0 = pnand %p1515_p12, %p1509_p1 }
  0x30   : > { %1519 = shalt.err (!%p1516_p0)
}
  0x31   : > { %s1719_s30 = smov 128   ;;  %s1720_s9 = smov 8  }
  0x32   : > { %1404 = dma.hbm_to_vmem [thread:$0]  (!%p1819_p11), %s2184_s2, 512, %s1812_s7, [#allocation6], %s1719_s30, %s1719_s30, %s1720_s9  }
  0x33   : > { %s2186_s3 = sld [smem:[#allocation18_spill]] }
  0x39   : > { %s1520_s16 = scalar_lea.hbm %s2186_s3, 512 }
  0x3a   : > { %p1521_p1 = scmp.ne.s32.totalorder %s2186_s3, %s1520_s16  ;;  %p1527_p10 = scmp.lt.u32.totalorder %s1520_s16, %s2186_s3 }
  0x3c   : > { %p1523_p2 = pnand %p1521_p1, %p1835_p13 }
  0x3e   : > { %p1524_p6 = pneg %p1523_p2 }
  0x40   : > { %p1529_p3 = pnand %p1527_p10, %p1524_p6 }
  0x42   : > { %1532 = shalt.err (!%p1529_p3)
}
  0x43   : > { %s1533_s7 = scalar_lea.vmem %s1823_s10, 512  ;;  %p1541_p12 = scmp.lt.s32.totalorder %s1823_s10, %s1823_s10 }
  0x44   : > { %p1534_p5 = scmp.ne.s32.totalorder %s1823_s10, %s1533_s7  ;;  %p1542_p0 = scmp.lt.s32.totalorder %s1533_s7, %s1533_s7 }
  0x46   : > { %p1536_p7 = pnand %p1534_p5, %p1835_p13  ;;  %p1543_p1 = por %p1542_p0, %p1541_p12 }
  0x48   : > { %p1537_p9 = pneg %p1536_p7 }
  0x4a   : > { %p1544_p2 = pnand %p1543_p1, %p1537_p9 }
  0x4c   : > { %1547 = shalt.err (!%p1544_p2)
}
  0x4d   : > { %1407 = dma.hbm_to_vmem [thread:$0]  (!%p1819_p11), %s2186_s3, 512, %s1823_s10, [#allocation9], %s1719_s30, %s1719_s30, %s1720_s9  }
  0x4e   : > { %s2187_s4 = sld [smem:[#allocation19_spill]] }
  0x54   : > { %s1548_s16 = scalar_lea.hbm %s2187_s4, 1024 }
  0x55   : > { %p1549_p6 = scmp.ne.s32.totalorder %s2187_s4, %s1548_s16  ;;  %p1555_p5 = scmp.lt.u32.totalorder %s1548_s16, %s2187_s4 }
  0x57   : > { %p1551_p10 = pnand %p1549_p6, %p1835_p13 }
  0x59   : > { %p1552_p3 = pneg %p1551_p10 }
  0x5b   : > { %p1557_p7 = pnand %p1555_p5, %p1552_p3 }
  0x5d   : > { %1560 = shalt.err (!%p1557_p7)
}
  0x5e   : > { %s1561_s7 = scalar_lea.vmem %s232_s12, 1024  ;;  %p1569_p1 = scmp.lt.s32.totalorder %s232_s12, %s232_s12 }
  0x5f   : > { %p1562_p9 = scmp.ne.s32.totalorder %s232_s12, %s1561_s7  ;;  %p1570_p2 = scmp.lt.s32.totalorder %s1561_s7, %s1561_s7 }
  0x61   : > { %p1564_p12 = pnand %p1562_p9, %p1835_p13  ;;  %p1571_p4 = por %p1570_p2, %p1569_p1 }
  0x63   : > { %p1565_p0 = pneg %p1564_p12 }
  0x65   : > { %p1572_p8 = pnand %p1571_p4, %p1565_p0 }
  0x67   : > { %1575 = shalt.err (!%p1572_p8)
}
  0x68   : > { %1410 = dma.hbm_to_vmem [thread:$0]  (!%p1819_p11), %s2187_s4, 1024, %s232_s12, [#allocation9], %s1719_s30, %s1719_s30, %s1720_s9  }
  0x69   : > { %s1908_s18 = sadd.s32 1, %s1714_s24   ;;  %s33_s13 = sadd.s32 1, %s1710_s23 }
  0x6a   : > { %s30_s8 = ssub.s32 %s1714_s24, %s1908_s18  ;;  %p40_p8 = scmp.ne.s32.totalorder %s1710_s23, %s1706_s22 }
  0x6b   : > { %p31_p4 = scmp.eq.s32.totalorder %s30_s8, 0  ;;  %p41_p13 = scmp.eq.s32.totalorder %s1714_s24, 0 }
  0x6c   : > { %p1425_p6 = scmp.lt.s32.totalorder %s1714_s24, 2  ;;  %p2188_p3 = scmp.eq.s32.totalorder %s1789_s25, 1 }
  0x6d   : > { %s1918_s14 = scalar_select %p31_p4, %s1710_s23, %s33_s13  }
  0x6e   : > { %p42_p10 = por %p41_p13, %p40_p8  ;;  %p1922_p5 = por %p2188_p3, %p40_p8 }
  0x6f   : > { %s248_s16 = sand.u32 1, %s1710_s23   ;;  %s1236_s17 = sshll.u32 %s1714_s24, 7 }
  0x70   : > { %s2189_s15 = scalar_select %p1922_p5, 1, 0 }
  0x71   : > { %s1928_s12 = sshll.u32 %s248_s16, 3  ;;  %s1933_s19 = scalar_lea.hbm %s2166_s0, %s1236_s17 }
  0x72   : > { %s252_s20 = scalar_lea.vmem [#allocation2], %s1928_s12  ;;  %p1936_p11 = pnand %p1425_p6, %p42_p10 }
  0x73   : > { %s259_s26 = sshll.u32 %s252_s20, 4  ;;  %s1945_s8 = scalar_lea.hbm %s2167_s1, %s1236_s17  ;;  %s1940_s26 = int_to_ptr.vmem [resolvable:$true] %s259_s26 }
  0x74   : > { %s249_s13 = scalar_lea.sflag [#allocation3], %s248_s16  ;;  %s1576_s30 = scalar_lea.hbm %s1933_s19, 128 }
  0x75   : > { %p1577_p7 = scmp.ne.s32.totalorder %s1933_s19, %s1576_s30  ;;  %p1578_p9 = pneg %p1936_p11 }
  0x76   : > { %s1581_s2 = scalar_lea.hbm %s2166_s0, 256  ;;  %p1582_p1 = scmp.lt.u32.totalorder %s1933_s19, %s2166_s0 }
  0x77   : > { %p1579_p12 = pnand %p1578_p9, %p1577_p7  ;;  %p1583_p2 = scmp.lt.u32.totalorder %s1581_s2, %s1576_s30 }
  0x78   : > { %p1585_p8 = scmp.lt.u32.totalorder %s1576_s30, %s1933_s19 }
  0x79   : > { %p1580_p0 = pneg %p1579_p12  ;;  %p1584_p4 = por %p1583_p2, %p1582_p1 }
  0x7b   : > { %p1586_p13 = por %p1585_p8, %p1584_p4 }
  0x7d   : > { %p1587_p6 = pnand %p1586_p13, %p1580_p0 }
  0x7f   : > { %1590 = shalt.err (!%p1587_p6)
}
  0x80   : > { %s1591_s16 = scalar_lea.vmem %s1940_s26, 128  ;;  %s1721_s17 = smov [#allocation2]  }
  0x81   : > { %p1592_p10 = scmp.ne.s32.totalorder %s1940_s26, %s1591_s16  ;;  %s1596_s10 = sshll.u32 %s1721_s17, 4  ;;  %s1597_s10 = int_to_ptr.vmem [resolvable:$false] %s1596_s10 }
  0x82   : > { %s1598_s3 = scalar_lea.vmem %s1597_s10, 256  ;;  %p1599_p12 = scmp.lt.s32.totalorder %s1940_s26, %s1597_s10 }
  0x83   : > { %p1594_p3 = pnand %p1592_p10, %p1578_p9  ;;  %p1600_p1 = scmp.lt.s32.totalorder %s1598_s3, %s1591_s16 }
  0x85   : > { %p1595_p7 = pneg %p1594_p3  ;;  %p1601_p2 = por %p1600_p1, %p1599_p12 }
  0x87   : > { %p1602_p4 = pnand %p1601_p2, %p1595_p7 }
  0x89   : > { %1605 = shalt.err (!%p1602_p4)
}
  0x8a   : > { %1414 = dma.hbm_to_vmem [thread:$0]  (!%p1936_p11), %s1933_s19, 128, %s1940_s26, %s249_s13  }
  0x8b   : > { %s266_s2 = sand.u32 1, %s1714_s24   ;;  %s270_s4 = scalar_lea.vmem [#allocation5], %s1928_s12 }
  0x8c   : > { %s277_s11 = sshll.u32 %s270_s4, 4  ;;  %s267_s30 = scalar_lea.sflag [#allocation6], %s266_s2  ;;  %s278_s11 = int_to_ptr.vmem [resolvable:$true] %s277_s11 }
  0x8d   : > { %s1606_s9 = scalar_lea.hbm %s1945_s8, 128  ;;  %s1611_s17 = scalar_lea.hbm %s2167_s1, 256 }
  0x8e   : > { %p1607_p0 = scmp.ne.s32.totalorder %s1945_s8, %s1606_s9  ;;  %p1612_p6 = scmp.lt.u32.totalorder %s1945_s8, %s2167_s1 }
  0x8f   : > { %p1613_p10 = scmp.lt.u32.totalorder %s1611_s17, %s1606_s9  ;;  %p1615_p7 = scmp.lt.u32.totalorder %s1606_s9, %s1945_s8 }
  0x90   : > { %p1609_p8 = pnand %p1607_p0, %p1578_p9 }
  0x91   : > { %p1614_p3 = por %p1613_p10, %p1612_p6 }
  0x92   : > { %p1610_p13 = pneg %p1609_p8 }
  0x93   : > { %p1616_p12 = por %p1615_p7, %p1614_p3 }
  0x95   : > { %p1617_p1 = pnand %p1616_p12, %p1610_p13 }
  0x97   : > { %1620 = shalt.err (!%p1617_p1)
}
  0x98   : > { %s1621_s12 = scalar_lea.vmem %s278_s11, 128  ;;  %s1722_s19 = smov [#allocation5]  }
  0x99   : > { %p1622_p2 = scmp.ne.s32.totalorder %s278_s11, %s1621_s12  ;;  %s1626_s26 = sshll.u32 %s1722_s19, 4  ;;  %s1627_s26 = int_to_ptr.vmem [resolvable:$false] %s1626_s26 }
  0x9a   : > { %s1628_s13 = scalar_lea.vmem %s1627_s26, 256  ;;  %p1629_p8 = scmp.lt.s32.totalorder %s278_s11, %s1627_s26 }
  0x9b   : > { %p1624_p4 = pnand %p1622_p2, %p1578_p9  ;;  %p1630_p5 = scmp.lt.s32.totalorder %s1628_s13, %s1621_s12 }
  0x9d   : > { %p1625_p0 = pneg %p1624_p4  ;;  %p1631_p6 = por %p1630_p5, %p1629_p8 }
  0x9f   : > { %p1632_p10 = pnand %p1631_p6, %p1625_p0 }
  0xa1   : > { %1635 = shalt.err (!%p1632_p10)
}
  0xa2   : > { %1417 = dma.hbm_to_vmem [thread:$0]  (!%p1936_p11), %s1945_s8, 128, %s278_s11, %s267_s30  }
  0xa3   : > { %p2191_p13 = scmp.ne.s32.totalorder %s2182_s29, 0 }
  0xa4   : > { %s1996_s2 = sand.u32 (!%p2191_p13), 1, %s1706_s22   ;;  %p2192_p5 = scmp.ne.s32.totalorder (!%p2191_p13), %s2180_s27, 0 }
  0xa5   : > { %286 = sbr.rel (%p2191_p13) target bundleno = 2788 (0xae4), region = 44  ;;  %s1999_s4 = sshll.u32 (!%p2191_p13), %s1996_s2, 3 }
  0xa6   : > { %s289_s9 = scalar_lea.sflag (!%p2191_p13), [#allocation3], %s1996_s2  ;;  %s292_s20 = scalar_lea.vmem (!%p2191_p13), [#allocation2], %s1999_s4 }
  0xac   : > { %1681 = dma.done.wait (%p2192_p5), %s289_s9, 128  }
  0xad   : > { %1683 = vsyncadd (%p2192_p5), %s289_s9, 4294967168  ;;  %s297_s29 = sand.u32 1, %s1789_s25   ;;  %s301_s8 = scalar_lea.vmem [#allocation5], %s1999_s4 }
  0xae   : > { %s298_s7 = scalar_lea.sflag [#allocation6], %s297_s29 }
  0xaf   : > { %1685 = dma.done.wait (%p2192_p5), %s298_s7, 128  }
  0xb0   : > { %1687 = vsyncadd (%p2192_p5), %s298_s7, 4294967168  ;;  %p2193_p11 = scmp.eq.s32.totalorder %s1789_s25, 0 }
  0xb2   : > { %1689 = dma.done.wait (%p2193_p11), [#allocation6], 512   ;;  %p2194_p9 = pmov %p2193_p11 }
  0xb4   : > { %1691 = vsyncadd (%p2194_p9), [#allocation6], 4294966784  ;;  %p2195_p3 = pmov %p2194_p9 }
  0xb6   : > { %1693 = dma.done.wait (%p2195_p3), [#allocation9], 1536   ;;  %p2196_p7 = pmov %p2195_p3 }
  0xb7   : > { %v1723_v0 = vmov 0.0   ;;  %vm1724_vm0 = vmmov 0   ;;  %v358_v1 = vld [vmem:[#allocation8] sm:$0xff]  ;;  %v359_v2 = vld [vmem:[#allocation8 + $0x8] sm:$0xff]  ;;  %v360_v6 = vld [vmem:[#allocation8 + $0x10] sm:$0xff]  ;;  %vm376_vm1 = vcmask 261120  }
  0xb8   : > { %1695 = vsyncadd (%p2196_p7), [#allocation9], 4294965760  ;;  %1303 = vmatprep.subr.bf16.mxu1 %v1723_v0  ;;  %1295 = vmatprep.subr.bf16.mxu0 %v1723_v0  ;;  %v352_v3 = vld [vmem:[#allocation7] sm:$0xff]  ;;  %v362_v4 = vpack.c.bf16 %v359_v2, %v358_v1  ;;  %v353_v5 = vld [vmem:[#allocation7 + $0x8] sm:$0xff]  ;;  %vm466_vm2 = vcmask 130048   ;;  %s1725_s27 = smov 112  }
  0xb9   : > { %1307 = vmatprep.mubr.msk.bf16.mxu1 %vm1724_vm0, %v1723_v0  ;;  %1299 = vmatprep.mubr.msk.bf16.mxu0 %vm1724_vm0, %v1723_v0  ;;  %v361_v7 = vld [vmem:[#allocation8 + $0x18] sm:$0xff]  ;;  %v356_v8 = vpack.c.bf16 %v353_v5, %v352_v3  ;;  %v354_v9 = vld [vmem:[#allocation7 + $0x10] sm:$0xff]  ;;  %v348_v14 = vld [vmem:[%s292_s20] sm:$0xff]  ;;  %vm513_vm3 = vcmask 64512   ;;  %s1726_s11 = smov 64   ;;  %vm532_vm4 = vcmask 1043456  }
  0xba   : > { %v355_v10 = vld [vmem:[#allocation7 + $0x18] sm:$0xff]  ;;  %1304 = vmatpush3.bf16.msra.mxu1 %v362_v4  ;;  %v363_v11 = vpack.c.bf16 %v361_v7, %v360_v6  ;;  %v349_v16 = vpack.c.bf16 %v348_v14, %v348_v14  ;;  %s1727_s30 = smov 48   ;;  %s1728_s16 = smov 96   ;;  %v366_v58 = vld [vmem:[#allocation10 + $0x10] sm:$0xff]  ;;  %v364_v1 = vld [vmem:[#allocation10] sm:$0xff] }
  0xbb   : > { %v350_v12 = vld [vmem:[%s301_s8] sm:$0xff]  ;;  %1305 = vmatprep.subr.bf16.mxu1 %v1723_v0  ;;  %1296 = vmatpush3.bf16.msra.mxu0 %v356_v8  ;;  %v357_v13 = vpack.c.bf16 %v355_v10, %v354_v9  ;;  %v365_v2 = vld [vmem:[#allocation10 + $0x8] sm:$0xff]  ;;  %s1729_s17 = smov 32   ;;  %s1730_s10 = smov 80  }
  0xbc   : > { %1297 = vmatprep.subr.bf16.mxu0 %v1723_v0  ;;  %v351_v15 = vpack.c.bf16 %v350_v12, %v350_v12  ;;  %v367_v59 = vld [vmem:[#allocation10 + $0x18] sm:$0xff]  ;;  %v372_v5 = vpack.c.bf16 %v365_v2, %v364_v1  ;;  %s1731_s3 = smov 16   ;;  %s1262_s26 = sshll.u32 %s1789_s25, 7 }
  0xbd   : > { %v373_v60 = vpack.c.bf16 %v367_v59, %v366_v58  ;;  %s346_s13 = scalar_lea.vmem [#allocation11], %s1999_s4  ;;  %s2122_s7 = scalar_lea.hbm %s2172_s6, %s1262_s26 }
  0xbe   : > { %1306 = vmatpush3.bf16.msra.mxu1 %v363_v11  ;;  %s1108_s9 = sshll.u32 %s346_s13, 4  ;;  %s1095_s8 = scalar_lea.sflag [#allocation4], %s1996_s2  ;;  %s2124_s9 = int_to_ptr.vmem [resolvable:$true] %s1108_s9 }
  0xbf   : > { %1298 = vmatpush3.bf16.msra.mxu0 %v357_v13  ;;  %1317 = vmatprep.subr.bf16.mxu1 %v1723_v0  ;;  %s1636_s25 = scalar_lea.vmem %s2124_s9, 128  ;;  %p2197_p1 = scmp.ne.s32.totalorder %s2189_s15, 0 }
  0xc0   : > { %1311 = vmatprep.subr.bf16.mxu0 %v1723_v0  ;;  %p1637_p12 = scmp.ne.s32.totalorder %s2124_s9, %s1636_s25  ;;  %s1732_s4 = smov [#allocation11]  }
  0xc1   : > { %1308 = vmatmul.mubr.msk.bf16.vlgmr.msra.gmra.mrb[0].mxu1 %vm376_vm1, %v351_v15 }
  0xc2   : > { %1300 = vmatmul.mubr.msk.bf16.vlgmr.msra.gmra.mrb[0].mxu0 %vm376_vm1, %v349_v16  ;;  %1319 = vmatprep.mubr.msk.bf16.mxu1 %vm1724_vm0, %v1723_v0  ;;  %p1638_p2 = pnand %p1637_p12, %p2197_p1 }
  0xc3   : > { %1313 = vmatprep.mubr.msk.bf16.mxu0 %vm1724_vm0, %v1723_v0 }
  0xc4   : > { %p1639_p4 = pneg %p1638_p2 }
 0x194   : > { %v458_v17 = vpop.f32.mrb[0].mxu1 }
 0x195   : > { %v2037_v18 = vpack.c.bf16 %v458_v17, %v458_v17  ;;  %v1309_v19 = vpop.f32.mrb[1].mxu1  ;;  %v414_v20 = vpop.f32.mrb[0].mxu0 }
 0x196   : > { %v461_v21 = vpop.f32.mrb[2].mxu1  ;;  %v420_v22 = vmul.f32 0.25, %v414_v20  ;;  %v1301_v23 = vpop.f32.mrb[1].mxu0 }
 0x197   : > { %580 = vrot.lane.b32.xlu0 %v2037_v18, %s1725_s27  ;;  %v1310_v24 = vpop.f32.mrb[3].mxu1  ;;  %v471_v25 = vsel %vm466_vm2, %v2037_v18, 0  ;;  %v417_v26 = vpop.f32.mrb[2].mxu0 }
 0x198   : > { %v2042_v27 = vpack.c.bf16 %v420_v22, %v420_v22  ;;  %1312 = vmatpush3.bf16.xpose.msra.mxu0 %v471_v25  ;;  %v1302_v28 = vpop.f32.mrb[3].mxu0 }
 0x199   : > { %1323 = vmatprep.subr.bf16.mxu0 %v1723_v0 }
 0x19b   : > { %578 = vrot.lane.b32.xlu0 %v2042_v27, %s1725_s27  ;;  %s1640_s27 = sshll.u32 %s1732_s4, 4  ;;  %s1641_s27 = int_to_ptr.vmem [resolvable:$false] %s1640_s27 }
 0x19c   : > { %p1643_p0 = scmp.lt.s32.totalorder %s2124_s9, %s1641_s27 }
 0x19f   : > { %1314 = vmatmul.mubr.msk.bf16.vlgmr.msra.gmra.mrb[4].mxu0 %vm466_vm2, %v2042_v27 }
 0x1a0   : > { %1325 = vmatprep.mubr.msk.bf16.mxu0 %vm1724_vm0, %v1723_v0 }
 0x209   : > { %v581_v29 = vpop.permute.xlu0 %580 }
 0x20a   : > { %v586_v30 = vsel %vm466_vm2, %v581_v29, 0 }
 0x20b   : > { %1324 = vmatpush3.bf16.xpose.msra.mxu0 %v586_v30 }
 0x20c   : > { %1335 = vmatprep.subr.bf16.mxu0 %v1723_v0 }
 0x20d   : > { %v579_v31 = vpop.permute.xlu0 %578 }
 0x212   : > { %1326 = vmatmul.mubr.msk.bf16.vlgmr.msra.gmra.mrb[8].mxu0 %vm466_vm2, %v579_v31 }
 0x213   : > { %1337 = vmatprep.mubr.msk.bf16.mxu0 %vm1724_vm0, %v1723_v0  ;;  %1336 = vmatpush3.bf16.msra.mxu0 %v373_v60 }
 0x214   : > { %1347 = vmatprep.subr.bf16.mxu0 %v1723_v0 }
 0x272   : > { %v507_v32 = vpop.f32.mrb[4].mxu0 }
 0x273   : > { %v1315_v33 = vpop.f32.mrb[5].mxu0  ;;  %v514_v34 = vsel %vm513_vm3, %v507_v32, -inf }
 0x274   : > { %515 = vmax.xlane.f32.xlu1 %v514_v34  ;;  %v510_v35 = vpop.f32.mrb[6].mxu0 }
 0x275   : > { %v1316_v36 = vpop.f32.mrb[7].mxu0 }
 0x2e5   : > { %v622_v37 = vpop.f32.mrb[8].mxu0 }
 0x2e6   : > { %v1327_v38 = vpop.f32.mrb[9].mxu0  ;;  %v628_v39 = vsel %vm513_vm3, %v622_v37, -inf }
 0x2e7   : > { %629 = vmax.xlane.f32.xlu1 %v628_v39  ;;  %v625_v40 = vpop.f32.mrb[10].mxu0 }
 0x2e8   : > { %v1328_v41 = vpop.f32.mrb[11].mxu0 }
 0x2f8   : > { %527 = vrot.lane.b32.xlu1 %v2037_v18, %s1726_s11  ;;  %s1642_s11 = scalar_lea.vmem %s1641_s27, 256 }
 0x2f9   : > { %p1644_p8 = scmp.lt.s32.totalorder %s1642_s11, %s1636_s25 }
 0x2fb   : > { %p1645_p6 = por %p1644_p8, %p1643_p0 }
 0x2fd   : > { %p1646_p10 = pnand %p1645_p6, %p1639_p4 }
 0x301   : > { %v516_v42 = vpop.xlane.xlu1 %515 }
 0x302   : > { %v517_v43 = vsub.f32 %v507_v32, %v516_v42 }
 0x304   : > { %v518_v44 = vmul.f32 1.442695, %v517_v43 }
 0x306   : > { %1476 = vpow2.f32 %v518_v44 }
 0x310   : > { %v1477_v45 = vpop.eup %1476 }
 0x311   : > { %v520_v46 = vsel %vm513_vm3, %v1477_v45, 0.0 }
 0x312   : > { %521 = vadd.xlane.f32.xlu0 %v520_v46 }
 0x374   : > { %v630_v47 = vpop.xlane.xlu1 %629 }
 0x375   : > { %v631_v48 = vsub.f32 %v622_v37, %v630_v47 }
 0x377   : > { %v632_v49 = vmul.f32 1.442695, %v631_v48 }
 0x378   : > { %v528_v50 = vpop.permute.xlu1 %527 }
 0x379   : > { %1478 = vpow2.f32 %v632_v49  ;;  %v534_v51 = vsel %vm532_vm4, %v528_v50, 0  ;;  %v368_v49 = vld [vmem:[#allocation10 + $0x20] sm:$0xff]  ;;  %v369_v50 = vld [vmem:[#allocation10 + $0x28] sm:$0xff] }
 0x37a   : > { %1318 = vmatpush3.bf16.msra.mxu1 %v534_v51  ;;  %v374_v51 = vpack.c.bf16 %v369_v50, %v368_v49 }
 0x37b   : > { %1329 = vmatprep.subr.bf16.mxu1 %v1723_v0 }
 0x383   : > { %v1479_v52 = vpop.eup %1478 }
 0x384   : > { %v634_v53 = vsel %vm513_vm3, %v1479_v52, 0.0 }
 0x385   : > { %635 = vadd.xlane.f32.xlu1 %v634_v53 }
 0x396   : > { %640 = vrot.lane.b32.xlu1 %v2037_v18, %s1727_s30 }
 0x39a   : > { %777 = vrot.lane.b32.xlu1 %v2037_v18, %s1728_s16 }
 0x39e   : > { %775 = vrot.lane.b32.xlu1 %v2042_v27, %s1728_s16 }
 0x39f   : > { %v522_v54 = vpop.xlane.xlu0 %521 }
 0x3a0   : > { %1480 = vrcp.f32 %v522_v54 }
 0x3aa   : > { %v1481_v55 = vpop.eup %1480 }
 0x3ab   : > { %v524_v56 = vmul.f32 %v1481_v55, %v1477_v45 }
 0x3ad   : > { %v525_v57 = vpack.c.bf16 %v524_v56, %v524_v56 }
 0x3af   : > { %1320 = vmatmul.mubr.msk.bf16.vlgmr.msra.gmra.mrb[4].mxu1 %vm513_vm3, %v525_v57 }
 0x3b0   : > { %1331 = vmatprep.mubr.msk.bf16.mxu1 %vm1724_vm0, %v1723_v0 }
 0x412   : > { %v636_v61 = vpop.xlane.xlu1 %635 }
 0x413   : > { %1482 = vrcp.f32 %v636_v61 }
 0x416   : > { %v641_v62 = vpop.permute.xlu1 %640 }
 0x417   : > { %v646_v63 = vsel %vm532_vm4, %v641_v62, 0 }
 0x418   : > { %1330 = vmatpush3.bf16.msra.mxu1 %v646_v63 }
 0x419   : > { %1341 = vmatprep.subr.bf16.mxu1 %v1723_v0 }
 0x41a   : > { %v778_v12 = vpop.permute.xlu1 %777 }
 0x41b   : > { %v783_v17 = vsel %vm466_vm2, %v778_v12, 0 }
 0x41d   : > { %v1483_v3 = vpop.eup %1482 }
 0x41e   : > { %v638_v4 = vmul.f32 %v1483_v3, %v1479_v52  ;;  %v776_v20 = vpop.permute.xlu1 %775 }
 0x420   : > { %v639_v6 = vpack.c.bf16 %v638_v4, %v638_v4  ;;  %v370_v4 = vld [vmem:[#allocation10 + $0x30] sm:$0xff] }
 0x422   : > { %1332 = vmatmul.mubr.msk.bf16.vlgmr.msra.gmra.mrb[8].mxu1 %vm513_vm3, %v639_v6 }
 0x423   : > { %1342 = vmatpush3.bf16.msra.mxu1 %v372_v5  ;;  %1343 = vmatprep.mubr.msk.bf16.mxu1 %vm1724_vm0, %v1723_v0 }
 0x424   : > { %1353 = vmatprep.subr.bf16.mxu1 %v1723_v0 }
 0x482   : > { %v570_v7 = vpop.f32.mrb[4].mxu1 }
 0x483   : > { %v576_v8 = vpack.c.bf16 %v570_v7, %v570_v7  ;;  %v1321_v9 = vpop.f32.mrb[5].mxu1 }
 0x484   : > { %v573_v10 = vpop.f32.mrb[6].mxu1 }
 0x485   : > { %v1322_v11 = vpop.f32.mrb[7].mxu1  ;;  %1344 = vmatmul.mubr.msk.bf16.vlgmr.msra.gmra.mrb[12].mxu1 %vm466_vm2, %v576_v8 }
 0x486   : > { %1355 = vmatprep.mubr.msk.bf16.mxu1 %vm1724_vm0, %v1723_v0 }
 0x4f5   : > { %v682_v13 = vpop.f32.mrb[8].mxu1 }
 0x4f6   : > { %v688_v14 = vpack.c.bf16 %v682_v13, %v682_v13  ;;  %v1333_v15 = vpop.f32.mrb[9].mxu1 }
 0x4f7   : > { %v685_v16 = vpop.f32.mrb[10].mxu1 }
 0x4f8   : > { %v1334_v19 = vpop.f32.mrb[11].mxu1  ;;  %1338 = vmatmul.mubr.msk.bf16.vlgmr.msra.gmra.mrb[12].mxu0 %vm466_vm2, %v688_v14 }
 0x4f9   : > { %1348 = vmatpush3.bf16.xpose.msra.mxu0 %v783_v17  ;;  %1349 = vmatprep.mubr.msk.bf16.mxu0 %vm1724_vm0, %v1723_v0 }
 0x4fa   : > { %1359 = vmatprep.subr.bf16.mxu0 %v1723_v0 }
 0x500   : > { %1350 = vmatmul.mubr.msk.bf16.vlgmr.msra.gmra.mrb[16].mxu0 %vm466_vm2, %v776_v20 }
 0x501   : > { %1361 = vmatprep.mubr.msk.bf16.mxu0 %vm1724_vm0, %v1723_v0  ;;  %1360 = vmatpush3.bf16.msra.mxu0 %v374_v51 }
 0x502   : > { %1371 = vmatprep.subr.bf16.mxu0 %v1723_v0 }
 0x558   : > { %v769_v21 = vpop.f32.mrb[12].mxu1 }
 0x559   : > { %v1345_v22 = vpop.f32.mrb[13].mxu1 }
 0x55a   : > { %v772_v23 = vpop.f32.mrb[14].mxu1 }
 0x55b   : > { %v1346_v24 = vpop.f32.mrb[15].mxu1  ;;  %v1260_v23 = vld [vmem:[%s2171_s5] ss:$0 sm:$0xff] }
 0x5cb   : > { %v726_v25 = vpop.f32.mrb[12].mxu0 }
 0x5cc   : > { %v2086_v26 = vadd.f32 %v769_v21, %v726_v25  ;;  %v1339_v28 = vpop.f32.mrb[13].mxu0 }
 0x5cd   : > { %v729_v29 = vpop.f32.mrb[14].mxu0 }
 0x5ce   : > { %v1340_v30 = vpop.f32.mrb[15].mxu0 }
 0x5d3   : > { %v819_v31 = vpop.f32.mrb[16].mxu0 }
 0x5d4   : > { %v1351_v32 = vpop.f32.mrb[17].mxu0  ;;  %v825_v33 = vsel %vm513_vm3, %v819_v31, -inf }
 0x5d5   : > { %826 = vmax.xlane.f32.xlu0 %v825_v33  ;;  %v822_v34 = vpop.f32.mrb[18].mxu0 }
 0x5d6   : > { %v1352_v35 = vpop.f32.mrb[19].mxu0 }
 0x5eb   : > { %837 = vrot.lane.b32.xlu0 %v2037_v18, %s1729_s17 }
 0x5ef   : > { %932 = vrot.lane.b32.xlu0 %v2037_v18, %s1730_s10 }
 0x5f3   : > { %930 = vrot.lane.b32.xlu0 %v2042_v27, %s1730_s10 }
 0x662   : > { %v827_v36 = vpop.xlane.xlu0 %826 }
 0x663   : > { %v828_v37 = vsub.f32 %v819_v31, %v827_v36 }
 0x665   : > { %v829_v38 = vmul.f32 1.442695, %v828_v37 }
 0x666   : > { %v838_v39 = vpop.permute.xlu0 %837 }
 0x667   : > { %1484 = vpow2.f32 %v829_v38  ;;  %v843_v40 = vsel %vm532_vm4, %v838_v39, 0 }
 0x668   : > { %1354 = vmatpush3.bf16.msra.mxu1 %v843_v40 }
 0x669   : > { %1365 = vmatprep.subr.bf16.mxu1 %v1723_v0 }
 0x66a   : > { %v933_v46 = vpop.permute.xlu0 %932 }
 0x66b   : > { %v938_v47 = vsel %vm466_vm2, %v933_v46, 0 }
 0x66e   : > { %v931_v48 = vpop.permute.xlu0 %930 }
 0x671   : > { %v1485_v41 = vpop.eup %1484 }
 0x672   : > { %v831_v42 = vsel %vm513_vm3, %v1485_v41, 0.0 }
 0x673   : > { %832 = vadd.xlane.f32.xlu1 %v831_v42 }
 0x700   : > { %v833_v43 = vpop.xlane.xlu1 %832 }
 0x701   : > { %1486 = vrcp.f32 %v833_v43 }
 0x70b   : > { %v1487_v44 = vpop.eup %1486 }
 0x70c   : > { %v835_v45 = vmul.f32 %v1487_v44, %v1485_v41 }
 0x70e   : > { %v836_v27 = vpack.c.bf16 %v835_v45, %v835_v45 }
 0x710   : > { %1356 = vmatmul.mubr.msk.bf16.vlgmr.msra.gmra.mrb[16].mxu1 %vm513_vm3, %v836_v27 }
 0x711   : > { %1366 = vmatpush3.bf16.xpose.msra.mxu1 %v938_v47  ;;  %1367 = vmatprep.mubr.msk.bf16.mxu1 %vm1724_vm0, %v1723_v0 }
 0x712   : > { %1377 = vmatprep.subr.bf16.mxu1 %v1723_v0 }
 0x718   : > { %1368 = vmatmul.mubr.msk.bf16.vlgmr.msra.gmra.mrb[20].mxu1 %vm466_vm2, %v931_v48 }
 0x719   : > { %1379 = vmatprep.mubr.msk.bf16.mxu1 %vm1724_vm0, %v1723_v0 }
 0x7e3   : > { %v879_v52 = vpop.f32.mrb[16].mxu1 }
 0x7e4   : > { %v885_v53 = vpack.c.bf16 %v879_v52, %v879_v52  ;;  %v1357_v54 = vpop.f32.mrb[17].mxu1 }
 0x7e5   : > { %v882_v55 = vpop.f32.mrb[18].mxu1 }
 0x7e6   : > { %v1358_v56 = vpop.f32.mrb[19].mxu1  ;;  %1362 = vmatmul.mubr.msk.bf16.vlgmr.msra.gmra.mrb[20].mxu0 %vm466_vm2, %v885_v53 }
 0x7e7   : > { %1373 = vmatprep.mubr.msk.bf16.mxu0 %vm1724_vm0, %v1723_v0  ;;  %v371_v0 = vld [vmem:[#allocation10 + $0x38] sm:$0xff] }
 0x7e8   : > { %v375_v5 = vpack.c.bf16 %v371_v0, %v370_v4 }
 0x7ea   : > { %1378 = vmatpush3.bf16.msra.mxu1 %v375_v5 }
 0x7eb   : > { %v974_v57 = vpop.f32.mrb[20].mxu1 }
 0x7ec   : > { %v1369_v58 = vpop.f32.mrb[21].mxu1  ;;  %v980_v59 = vsel %vm513_vm3, %v974_v57, -inf }
 0x7ed   : > { %981 = vmax.xlane.f32.xlu0 %v980_v59  ;;  %v977_v60 = vpop.f32.mrb[22].mxu1 }
 0x7ee   : > { %v1370_v61 = vpop.f32.mrb[23].mxu1 }
 0x87a   : > { %v982_v62 = vpop.xlane.xlu0 %981 }
 0x87b   : > { %v983_v63 = vsub.f32 %v974_v57, %v982_v62 }
 0x87d   : > { %v984_v1 = vmul.f32 1.442695, %v983_v63 }
 0x87f   : > { %1488 = vpow2.f32 %v984_v1 }
 0x889   : > { %v1489_v2 = vpop.eup %1488 }
 0x88a   : > { %v986_v3 = vsel %vm513_vm3, %v1489_v2, 0.0 }
 0x88b   : > { %987 = vadd.xlane.f32.xlu1 %v986_v3 }
 0x89c   : > { %992 = vrot.lane.b32.xlu1 %v2037_v18, %s1731_s3 }
 0x8b9   : > { %v923_v6 = vpop.f32.mrb[20].mxu0 }
 0x8ba   : > { %v929_v7 = vadd.f32 %v923_v6, %v2086_v26  ;;  %v1363_v8 = vpop.f32.mrb[21].mxu0 }
 0x8bb   : > { %v926_v9 = vpop.f32.mrb[22].mxu0 }
 0x8bc   : > { %v1364_v10 = vpop.f32.mrb[23].mxu0 }
 0x918   : > { %v988_v11 = vpop.xlane.xlu1 %987 }
 0x919   : > { %1490 = vrcp.f32 %v988_v11 }
 0x91c   : > { %v993_v12 = vpop.permute.xlu1 %992 }
 0x91d   : > { %v998_v13 = vsel %vm532_vm4, %v993_v12, 0 }
 0x91e   : > { %1372 = vmatpush3.bf16.msra.mxu0 %v998_v13 }
 0x923   : > { %v1491_v14 = vpop.eup %1490 }
 0x924   : > { %v990_v18 = vmul.f32 %v1491_v14, %v1489_v2 }
 0x926   : > { %v991_v15 = vpack.c.bf16 %v990_v18, %v990_v18 }
 0x928   : > { %1374 = vmatmul.mubr.msk.bf16.vlgmr.msra.gmra.mrb[24].mxu0 %vm513_vm3, %v991_v15 }
 0x9fb   : > { %v1034_v16 = vpop.f32.mrb[24].mxu0 }
 0x9fc   : > { %v1040_v17 = vpack.c.bf16 %v1034_v16, %v1034_v16  ;;  %v1375_v19 = vpop.f32.mrb[25].mxu0 }
 0x9fd   : > { %v1037_v20 = vpop.f32.mrb[26].mxu0 }
 0x9fe   : > { %v1376_v21 = vpop.f32.mrb[27].mxu0  ;;  %1380 = vmatmul.mubr.msk.bf16.vlgmr.msra.gmra.mrb[24].mxu1 %vm466_vm2, %v1040_v17 }
 0xad1   : > { %v1078_v22 = vpop.f32.mrb[24].mxu1 }
 0xad2   : > { %v1084_v24 = vadd.f32 %v1078_v22, %v929_v7  ;;  %v1381_v25 = vpop.f32.mrb[25].mxu1 }
 0xad3   : > { %v1081_v26 = vpop.f32.mrb[26].mxu1 }
 0xad4   : > { %v1092_v28 = vadd.f32 %v1260_v23, %v1084_v24  ;;  %v1382_v29 = vpop.f32.mrb[27].mxu1 }
 0xad6   : > { %1093 = vst [vmem:[%s346_s13] sm:$0xff] %v1092_v28 }
 0xad7   : > { %1649 = shalt.err (!%p1646_p10)
}
 0xad8   : > { %s1650_s2 = scalar_lea.hbm %s2122_s7, 128  ;;  %s1654_s17 = scalar_lea.hbm %s2172_s6, 256 }
 0xad9   : > { %p1651_p13 = scmp.ne.s32.totalorder %s2122_s7, %s1650_s2  ;;  %p1655_p9 = scmp.lt.u32.totalorder %s2122_s7, %s2172_s6 }
 0xada   : > { %p1656_p3 = scmp.lt.u32.totalorder %s1654_s17, %s1650_s2  ;;  %p1658_p12 = scmp.lt.u32.totalorder %s1650_s2, %s2122_s7 }
 0xadb   : > { %p1652_p5 = pnand %p1651_p13, %p2197_p1 }
 0xadc   : > { %p1657_p7 = por %p1656_p3, %p1655_p9 }
 0xadd   : > { %p1653_p11 = pneg %p1652_p5 }
 0xade   : > { %p1659_p2 = por %p1658_p12, %p1657_p7 }
 0xae0   : > { %p1660_p4 = pnand %p1659_p2, %p1653_p11 }
 0xae2   : > { %1663 = shalt.err (!%p1660_p4)
}
 0xae3   : > { %1399 = dma.vmem_to_hbm [thread:$0]  (%p2197_p1), %s2124_s9, 128, %s2122_s7, %s1095_s8  }
 0xae4 PF: > { %s1120_s12 = sand.u32 1, %s1702_s21   ;;  %p2198_p0 = scmp.ne.s32.totalorder %s2181_s28, 0 }
 0xae5   : > { %p2199_p8 = scmp.ge.s32.totalorder %s1714_s24, 2  ;;  %s1121_s19 = scalar_lea.sflag [#allocation4], %s1120_s12 }
 0xae7   : > { %p1419_p6 = pnand %p2199_p8, %p2198_p0 }
 0xae9   : > { %1697 = dma.done.wait (!%p1419_p6), %s1121_s19, 128  }
 0xaea   : > { %1699 = vsyncadd (!%p1419_p6), %s1121_s19, 4294967168  ;;  %p23_p10 = scmp.ge.s32.totalorder %s1908_s18, 4   ;;  %s2200_s21 = smov %s1706_s22 }
 0xaeb   : > { %s2201_s22 = smov %s1710_s23  ;;  %s2202_s23 = smov %s1918_s14 }
 0xaec   : > { %s2203_s24 = smov %s1908_s18  ;;  %25 = sbr.rel (!%p23_p10) target bundleno = 12 (0xc), region = 114 }
 0xaf3   :  { %1126 = vsyncpa [#allocation3], 1 }
 0xaf4   :  { %1128 = vsyncpa [#allocation3 + $0x1], 1 }
 0xaf5   :  { %1129 = vsyncpa [#allocation6], 1 }
 0xaf6   :  { %1131 = vsyncpa [#allocation6 + $0x1], 1 }
 0xaf7   :  { %1132 = vsyncpa [#allocation9], 1 }
 0xaf8   :  { %1133 = vsyncpa [#allocation4], 1 }
 0xaf9   :  { %1135 = vsyncpa [#allocation4 + $0x1], 1 }

</bundles_post_ra>
